<compile_context>
chip_gen: v7x
topology: tpu7x:2x2x1
jax: 0.10.0
libtpu: 0.0.40
codegen_flags: <defaults>
</compile_context>

<pallas_src>
import math
import functools

import jax
import jax.numpy as jnp
from jax.experimental import pallas as pl
from jax.experimental.pallas import tpu as pltpu

_LANES = 128


def _make_pe(max_length: int, n_embd: int) -> jnp.ndarray:
    """Fixed sinusoidal positional encoding — same math as the PyTorch __init__
    (note: the module uses log(1000), not the usual log(10000); we match it)."""
    position = jnp.arange(max_length, dtype=jnp.float32)[:, None]              # (L, 1)
    div_term = jnp.exp(jnp.arange(0, n_embd, 2, dtype=jnp.float32)
                       * (-math.log(1000.0) / n_embd))                         # (E/2,)
    pe = jnp.zeros((max_length, n_embd), dtype=jnp.float32)
    pe = pe.at[:, 0::2].set(jnp.sin(position * div_term))
    pe = pe.at[:, 1::2].set(jnp.cos(position * div_term))
    return pe


def _pos_enc_kernel(seed_ref, x_ref, pe_ref, o_ref, *, p: float, training: bool):
    # x_ref: (Bblk, TILE_R, 128); pe_ref: (1, TILE_R, 128) — broadcasts over batch.
    pe_tile = pe_ref[...].astype(x_ref.dtype)          # cast once per tile
    y = x_ref[...] + pe_tile
    if training and p > 0.0:
        if p >= 1.0:
            # Drop everything (avoids uint32 threshold overflow at p == 1).
            y = jnp.zeros_like(y)
        else:
            # Bernoulli keep-mask from the HW PRNG, scaled by 1/(1-p).
            # Unique stream per grid step; caller must vary `seed` across steps.
            # (Exact PyTorch RNG stream cannot be reproduced; semantics match.)
            pltpu.prng_seed(seed_ref[0]
                            + pl.program_id(0) * pl.num_programs(1)
                            + pl.program_id(1))
            bits = pltpu.bitcast(pltpu.prng_random_bits(y.shape), jnp.uint32)
            thresh = jnp.uint32(min(int(p * float(2 ** 32)), 2 ** 32 - 1))
            keep = bits >= thresh
            y = jnp.where(keep, y * (1.0 / (1.0 - p)), jnp.zeros_like(y))
    o_ref[...] = y.astype(o_ref.dtype)


def positional_encoding(x: jnp.ndarray,
                        pe: jnp.ndarray,
                        *,
                        dropout_p: float = 0.2,
                        training: bool = False,
                        seed: int = 0,
                        max_tile_rows: int = 2048) -> jnp.ndarray:
    """Pallas TPU PositionalEncoding.forward.

    x:  (B, T, E) float
    pe: (max_length, E) float32, with T <= max_length
    """
    B, T, E = x.shape
    assert pe.shape[1] == E and T <= pe.shape[0]

    # Lane-dense flattened view: (B, T*E) -> (B, R, 128), padded if needed so the
    # last dim is always a full 128 lanes and the row-tile is a legal block.
    L = T * E
    R = pl.cdiv(L, _LANES)
    if R <= max_tile_rows:
        tile_r, r_pad = R, R                       # full dim -> no sublane constraint
    else:
        tile_r = max_tile_rows                     # multiple of 8 -> legal block
        r_pad = pl.cdiv(R, tile_r) * tile_r
    l_pad = r_pad * _LANES

    x_flat = x.reshape(B, L)
    pe_flat = pe[:T].reshape(1, L)
    if l_pad != L:
        x_flat = jnp.pad(x_flat, ((0, 0), (0, l_pad - L)))
        pe_flat = jnp.pad(pe_flat, ((0, 0), (0, l_pad - L)))
    x3 = x_flat.reshape(B, r_pad, _LANES)
    pe3 = pe_flat.reshape(1, r_pad, _LANES)

    num_t = r_pad // tile_r
    if num_t == 1 and B * r_pad <= max_tile_rows:
        # Small problem: a single grid step covering everything (avoid per-step overhead).
        grid = (1, 1)
        x_spec = pl.BlockSpec((B, r_pad, _LANES), lambda t, b, seed: (0, 0, 0))
        pe_spec = pl.BlockSpec((1, r_pad, _LANES), lambda t, b, seed: (0, 0, 0))
        out_spec = pl.BlockSpec((B, r_pad, _LANES), lambda t, b, seed: (0, 0, 0))
    else:
        # Tile axis outer, batch inner: pe block index is independent of b, so the
        # pe tile is DMA'd once per tile and stays resident across the batch loop.
        grid = (num_t, B)
        x_spec = pl.BlockSpec((1, tile_r, _LANES), lambda t, b, seed: (b, t, 0))
        pe_spec = pl.BlockSpec((1, tile_r, _LANES), lambda t, b, seed: (0, t, 0))
        out_spec = pl.BlockSpec((1, tile_r, _LANES), lambda t, b, seed: (b, t, 0))

    kernel = functools.partial(_pos_enc_kernel, p=dropout_p, training=training)
    seed_arr = jnp.array([seed], dtype=jnp.int32)

    out3 = pl.pallas_call(
        kernel,
        out_shape=jax.ShapeDtypeStruct((B, r_pad, _LANES), x.dtype),
        grid_spec=pltpu.PrefetchScalarGridSpec(
            num_scalar_prefetch=1,
            grid=grid,
            in_specs=[x_spec, pe_spec],
            out_specs=out_spec,
        ),
        compiler_params=pltpu.CompilerParams(
            dimension_semantics=("parallel", "parallel")),
    )(seed_arr, x3, pe3)

    return out3.reshape(B, l_pad)[:, :L].reshape(B, T, E)


if __name__ == "__main__":
    # --- small test (module-scale shapes): B=2, T=8, E=n_embd=64 ---
    B, T, E = 2, 8, 64
    MAX_LEN = 16
    key = jax.random.PRNGKey(0)
    x = jax.random.normal(key, (B, T, E), dtype=jnp.float32)
    pe = _make_pe(MAX_LEN, E)

    out = positional_encoding(x, pe, dropout_p=0.2, training=False)  # eval mode
    out = jax.block_until_ready(out)
    ref = x + pe[:T][None, :, :]
    assert out.shape == (B, T, E)
    assert jnp.allclose(out, ref, atol=1e-6), "mismatch vs reference (small)"

    # --- exercise the tiled (num_tiles, B) path as well ---
    B2, T2 = 2, 8192
    pe2 = _make_pe(T2, E)
    x2 = jax.random.normal(jax.random.PRNGKey(1), (B2, T2, E), dtype=jnp.float32)
    out2 = jax.block_until_ready(positional_encoding(x2, pe2, training=False))
    ref2 = x2 + pe2[:T2][None, :, :]
    assert jnp.allclose(out2, ref2, atol=1e-6), "mismatch vs reference (tiled)"

    print("KERNEL_OK")
</pallas_src>

<mosaic_0001>
module attributes {stable_mosaic.version = 11 : i64} {
  func.func @_pos_enc_kernel(%arg0: i32, %arg1: i32, %arg2: memref<1xi32, #tpu.memory_space<smem>>, %arg3: memref<2x4x128xf32, #tpu.memory_space<vmem>>, %arg4: memref<1x4x128xf32, #tpu.memory_space<vmem>>, %arg5: memref<2x4x128xf32, #tpu.memory_space<vmem>>) attributes {dimension_semantics = [#tpu.dimension_semantics<parallel>, #tpu.dimension_semantics<parallel>], iteration_bounds = array<i64: 1, 1>, scalar_prefetch = 1 : i64, scratch_operands = 0 : i64, tpu.core_type = #tpu.core_type<tc>, window_params = [{pipeline_mode = #tpu.pipeline_mode<synchronous>, transform_indices = @transform_0, window_bounds = array<i64: 2, 4, 128>}, {pipeline_mode = #tpu.pipeline_mode<synchronous>, transform_indices = @transform_1, window_bounds = array<i64: 1, 4, 128>}, {pipeline_mode = #tpu.pipeline_mode<synchronous>, transform_indices = @transform_2, window_bounds = array<i64: 2, 4, 128>}]} {
    %c0 = arith.constant 0 : index
    %c0_0 = arith.constant 0 : index
    %c0_1 = arith.constant 0 : index
    %0 = vector.load %arg4[%c0, %c0_0, %c0_1] : memref<1x4x128xf32, #tpu.memory_space<vmem>>, vector<1x4x128xf32>
    %c0_2 = arith.constant 0 : index
    %c0_3 = arith.constant 0 : index
    %c0_4 = arith.constant 0 : index
    %1 = vector.load %arg3[%c0_2, %c0_3, %c0_4] : memref<2x4x128xf32, #tpu.memory_space<vmem>>, vector<2x4x128xf32>
    %2 = vector.broadcast %0 : vector<1x4x128xf32> to vector<2x4x128xf32>
    %3 = arith.addf %1, %2 : vector<2x4x128xf32>
    %c0_5 = arith.constant 0 : index
    %c0_6 = arith.constant 0 : index
    %c0_7 = arith.constant 0 : index
    %4 = vector.load %arg5[%c0_5, %c0_6, %c0_7] : memref<2x4x128xf32, #tpu.memory_space<vmem>>, vector<2x4x128xf32>
    tpu.vector_store %arg5[%c0_5, %c0_6, %c0_7], %3 {strides = array<i32>} : memref<2x4x128xf32, #tpu.memory_space<vmem>>, vector<2x4x128xf32>,
    return
  }
  func.func @transform_0(%arg0: i32, %arg1: i32, %arg2: memref<1xi32, #tpu.memory_space<smem>>) -> (i32, i32, i32) {
    %c0_i32 = arith.constant 0 : i32
    %c0_i32_0 = arith.constant 0 : i32
    %c0_i32_1 = arith.constant 0 : i32
    %c0_i32_2 = arith.constant 0 : i32
    return %c0_i32, %c0_i32_0, %c0_i32_1 : i32, i32, i32
  }
  func.func @transform_1(%arg0: i32, %arg1: i32, %arg2: memref<1xi32, #tpu.memory_space<smem>>) -> (i32, i32, i32) {
    %c0_i32 = arith.constant 0 : i32
    %c0_i32_0 = arith.constant 0 : i32
    %c0_i32_1 = arith.constant 0 : i32
    %c0_i32_2 = arith.constant 0 : i32
    return %c0_i32, %c0_i32_0, %c0_i32_1 : i32, i32, i32
  }
  func.func @transform_2(%arg0: i32, %arg1: i32, %arg2: memref<1xi32, #tpu.memory_space<smem>>) -> (i32, i32, i32) {
    %c0_i32 = arith.constant 0 : i32
    %c0_i32_0 = arith.constant 0 : i32
    %c0_i32_1 = arith.constant 0 : i32
    %c0_i32_2 = arith.constant 0 : i32
    return %c0_i32, %c0_i32_0, %c0_i32_1 : i32, i32, i32
  }
}

</mosaic_0001>

<bundles_post_ra>
// kernel: tpu_custom_call.1
= control target key start
LH: loop header
LB: loop body
LE: loop exit
PB: predicated region body
PF: predicated region fallthrough
CT: control target
= control target key end

     0   :  { %9 = vsyncpa [#allocation5], 0  ;;  %s161_s0 = inlined_call_operand.<no memory space> [shape: s32[1], index: 0, kind: input, shape index: {}]   ;;  %s162_s1 = inlined_call_operand.hbm [shape: f32[2,4,128], index: 1, kind: input, shape index: {}]   ;;  %s163_s2 = inlined_call_operand.vmem [shape: f32[1,4,128], index: 2, kind: input, shape index: {}]   ;;  %s164_s3 = inlined_call_operand.hbm [shape: f32[2,4,128], index: 3, kind: output, shape index: {}]  }
   0x1   :  { %10 = vsyncpa [#allocation6], 0  ;;  %s104_s12 = smov [#allocation4]   ;;  %s56_s16 = scalar_lea.hbm %s162_s1, 128 }
   0x2   :  { %s16_s13 = sshll.u32 %s104_s12, 4  ;;  %p57_p0 = scmp.ne.s32.totalorder %s162_s1, %s56_s16  ;;  %s17_s13 = int_to_ptr.vmem [resolvable:$true] %s16_s13 }
   0x3   :  { %p60_p1 = scmp.lt.u32.totalorder %s56_s16, %s162_s1 }
   0x5   :  { %p62_p2 = pnand %p60_p1, %p57_p0 }
   0x7   :  { %65 = shalt.err (!%p62_p2)
}
   0x8   :  { %s66_s20 = scalar_lea.vmem %s17_s13, 128  ;;  %p71_p4 = scmp.lt.s32.totalorder %s17_s13, %s17_s13 }
   0x9   :  { %p67_p3 = scmp.ne.s32.totalorder %s17_s13, %s66_s20  ;;  %p72_p5 = scmp.lt.s32.totalorder %s66_s20, %s66_s20 }
   0xb   :  { %p73_p6 = por %p72_p5, %p71_p4 }
   0xd   :  { %p74_p7 = pnand %p73_p6, %p67_p3 }
   0xf   :  { %77 = shalt.err (!%p74_p7)
}
  0x10   :  { %s105_s21 = smov 64   ;;  %s106_s22 = smov 4  }
  0x11   :  { %22 = dma.hbm_to_vmem [thread:$0]  %s162_s1, 128, %s17_s13, [#allocation5], %s105_s21, %s105_s21, %s106_s22  }
  0x12   :  { %100 = dma.done.wait [#allocation5], 128  }
  0x13   :  { %101 = vsyncadd [#allocation5], 4294967168  ;;  %s107_s25 = smov [#allocation7]   ;;  %v28_v0 = vld [vmem:[%s163_s2] sm:$0xf] }
  0x14   :  { %s40_s26 = sshll.u32 %s107_s25, 4  ;;  %v29_v1 = vld [vmem:[#allocation4] sm:$0xf]  ;;  %v30_v2 = vld [vmem:[#allocation4 + $0x4] sm:$0xf]  ;;  %s41_s26 = int_to_ptr.vmem [resolvable:$true] %s40_s26 }
  0x15   :  { %v31_v3 = vadd.f32 %v29_v1, %v28_v0  ;;  %v32_v4 = vadd.f32 %v30_v2, %v28_v0  ;;  %s78_s29 = scalar_lea.vmem %s41_s26, 128  ;;  %p83_p9 = scmp.lt.s32.totalorder %s41_s26, %s41_s26 }
  0x16   :  { %p79_p8 = scmp.ne.s32.totalorder %s41_s26, %s78_s29  ;;  %p84_p10 = scmp.lt.s32.totalorder %s78_s29, %s78_s29 }
  0x17   :  { %33 = vst [vmem:[#allocation7] sm:$0xf] %v31_v3  ;;  %34 = vst [vmem:[#allocation7 + $0x4] sm:$0xf] %v32_v4 }
  0x18   :  { %p85_p11 = por %p84_p10, %p83_p9 }
  0x1a   :  { %p86_p12 = pnand %p85_p11, %p79_p8 }
  0x1c   :  { %89 = shalt.err (!%p86_p12)
}
  0x1d   :  { %s90_s4 = scalar_lea.hbm %s164_s3, 128 }
  0x1e   :  { %p91_p13 = scmp.ne.s32.totalorder %s164_s3, %s90_s4  ;;  %p94_p0 = scmp.lt.u32.totalorder %s90_s4, %s164_s3 }
  0x20   :  { %p96_p1 = pnand %p94_p0, %p91_p13 }
  0x22   :  { %99 = shalt.err (!%p96_p1)
}
  0x23   :  { %46 = dma.vmem_to_hbm [thread:$0]  %s41_s26, 128, %s164_s3, [#allocation6], %s105_s21, %s105_s21, %s106_s22  }
  0x24   :  { %102 = dma.done.wait [#allocation6], 128  }
  0x25   :  { %103 = vsyncadd [#allocation6], 4294967168 }
  0x26   :  { %50 = vsyncpa [#allocation5], 1 }
  0x27   :  { %51 = vsyncpa [#allocation6], 1 }

</bundles_post_ra>
